<compile_context>
chip_gen: v5e
topology: v5e:2x2
jax: 0.10.0
libtpu: 0.0.40
codegen_flags: <defaults>
</compile_context>

<pallas_src>
import jax
import jax.numpy as jnp
from jax import lax
from jax.experimental import pallas as pl
from jax.experimental.pallas import tpu as pltpu


# ---------------------------------------------------------------------------
# Tiling policy
# ---------------------------------------------------------------------------

def _vmem_config():
    """(vmem_limit_bytes, block_budget_bytes) per TPU generation."""
    cap = 64 * 1024 * 1024
    try:
        info = pltpu.get_tpu_info()
        cap = int(getattr(info, "vmem_capacity_bytes", cap) or cap)
    except Exception:
        pass
    if cap >= 100 * 1024 * 1024:          # v5e / v6e: 128 MiB physical VMEM
        limit = 64 * 1024 * 1024
    else:                                  # v7x: 64 MiB per TensorCore
        limit = 40 * 1024 * 1024
    # Budget for (2x double-buffered input + 2x output + scratch); leave
    # headroom for compiler-internal scratch.
    budget = int(limit * 0.8)
    return limit, budget


def _sublane_align(itemsize):
    # dtype-aware sublane packing: f32 -> 8, bf16 -> 16, int8/fp8 -> 32
    return {4: 8, 2: 16, 1: 32}.get(itemsize, 8)


def _pick_tiles(N, D, H, W, itemsize, block_budget):
    """Pick (d_chunk, tH). W is never narrowed (full width, DMA-contiguous).

    Preference: full D (no reduction grid axis) with the largest tH that fits
    and still leaves >= 2 parallel grid steps; only if even tH=min doesn't fit
    do we split D (scratch-accumulator path)."""
    sub = _sublane_align(itemsize)
    th_cands = sorted(
        {h for h in range(1, H + 1) if H % h == 0 and h % sub == 0} | {H},
        reverse=True)
    d_cands = sorted({d for d in range(1, D + 1) if D % d == 0}, reverse=True)

    def fits(dc, th):
        in_b = dc * th * W * itemsize          # one input buffer
        out_b = th * W * itemsize              # one output buffer
        acc_b = th * W * 4 if dc < D else 0    # f32 scratch accumulator
        return 2 * in_b + 2 * out_b + acc_b <= block_budget

    for dc in d_cands:
        fitting = [th for th in th_cands if fits(dc, th)]
        if not fitting:
            continue
        # Prefer a tiling that leaves >= 2 parallel grid steps (feeds both
        # TensorCores on v7x).
        for th in fitting:
            if N * (H // th) >= 2:
                return dc, th
        return dc, fitting[0]
    # Ultimate fallback: smallest legal tile, D fully split.
    return 1, th_cands[-1]


def _row_chunks(th, rc):
    chunks, r = [], 0
    while r < th:
        size = min(rc, th - r)
        chunks.append((r, size))
        r += size
    return chunks


# ---------------------------------------------------------------------------
# Kernels
# ---------------------------------------------------------------------------

def _accumulate_rows(prob_ref, r0, rs, n_d, d_base_f):
    """sum_d (d_base_f + d) * prob_ref[d, r0:r0+rs, :] in f32 (vreg-resident)."""
    w = prob_ref.shape[-1]
    acc0 = jnp.zeros((rs, w), jnp.float32)
    if n_d <= 32:
        acc = acc0
        for d in range(n_d):
            x = prob_ref[d, pl.ds(r0, rs), :].astype(jnp.float32)
            acc = acc + (d_base_f + jnp.float32(d)) * x
        return acc

    def body(d, acc):
        x = prob_ref[d, pl.ds(r0, rs), :].astype(jnp.float32)
        return acc + (d_base_f + d.astype(jnp.float32)) * x

    return lax.fori_loop(0, n_d, body, acc0, unroll=8)


def _make_simple_kernel(D, row_chunks):
    """Full D inside the block: write the output tile directly (no scratch)."""
    def kernel(prob_ref, out_ref):
        for r0, rs in row_chunks:
            acc = _accumulate_rows(prob_ref, r0, rs, D, 0.0)
            out_ref[pl.ds(r0, rs), :] = acc.astype(out_ref.dtype)
    return kernel


def _make_dsplit_kernel(d_chunk, row_chunks):
    """D split across innermost ("arbitrary") grid axis with f32 scratch acc."""
    def kernel(prob_ref, out_ref, acc_ref):
        k = pl.program_id(2)
        d_base_f = (k * d_chunk).astype(jnp.float32)
        is_last = k == pl.num_programs(2) - 1

        for r0, rs in row_chunks:
            part = _accumulate_rows(prob_ref, r0, rs, d_chunk, d_base_f)

            @pl.when(k == 0)
            def _init():
                acc_ref[pl.ds(r0, rs), :] = part

            @pl.when(k > 0)
            def _accum():
                acc_ref[pl.ds(r0, rs), :] = acc_ref[pl.ds(r0, rs), :] + part

        @pl.when(is_last)
        def _finalize():
            for r0, rs in row_chunks:
                out_ref[pl.ds(r0, rs), :] = (
                    acc_ref[pl.ds(r0, rs), :].astype(out_ref.dtype))
    return kernel


# ---------------------------------------------------------------------------
# Wrapper
# ---------------------------------------------------------------------------

def disparity_regression(prob):
    """prob: (N, D, H, W) float array -> (N, H, W) expected disparity."""
    N, D, H, W = prob.shape
    itemsize = jnp.dtype(prob.dtype).itemsize

    vmem_limit, block_budget = _vmem_config()
    d_chunk, th = _pick_tiles(N, D, H, W, itemsize, block_budget)
    n_h = H // th
    n_d = D // d_chunk

    # Row-chunk size keeps the f32 partial accumulator well under the vreg
    # budget (cap ~32K f32 elements) while respecting dtype sublane packing.
    rc = _sublane_align(itemsize)
    if rc > 8 and rc * W > 32768:
        rc = 8
    row_chunks = _row_chunks(th, rc)

    cost = pl.CostEstimate(
        flops=2 * N * D * H * W,
        transcendentals=0,
        bytes_accessed=N * D * H * W * itemsize + N * H * W * itemsize,
    )

    if n_d == 1:
        kernel = _make_simple_kernel(D, row_chunks)
        grid = (N, n_h)
        grid_spec = pltpu.PrefetchScalarGridSpec(
            num_scalar_prefetch=0,
            grid=grid,
            in_specs=[
                pl.BlockSpec((None, D, th, W), lambda n, h: (n, 0, h, 0)),
            ],
            out_specs=pl.BlockSpec((None, th, W), lambda n, h: (n, h, 0)),
        )
        dims = ("parallel", "parallel")
    else:
        kernel = _make_dsplit_kernel(d_chunk, row_chunks)
        grid = (N, n_h, n_d)
        grid_spec = pltpu.PrefetchScalarGridSpec(
            num_scalar_prefetch=0,
            grid=grid,
            in_specs=[
                pl.BlockSpec((None, d_chunk, th, W),
                             lambda n, h, k: (n, k, h, 0)),
            ],
            out_specs=pl.BlockSpec((None, th, W), lambda n, h, k: (n, h, 0)),
            scratch_shapes=[pltpu.VMEM((th, W), jnp.float32)],
        )
        dims = ("parallel", "parallel", "arbitrary")

    return pl.pallas_call(
        kernel,
        out_shape=jax.ShapeDtypeStruct((N, H, W), prob.dtype),
        grid_spec=grid_spec,
        compiler_params=pltpu.CompilerParams(
            dimension_semantics=dims,
            vmem_limit_bytes=vmem_limit,
        ),
        cost_estimate=cost,
    )(prob)


def disparity_regression_ref(prob):
    D = prob.shape[1]
    disp = jnp.arange(D, dtype=jnp.float32).reshape(1, D, 1, 1)
    return jnp.sum(disp * prob.astype(jnp.float32), axis=1).astype(prob.dtype)


if __name__ == "__main__":
    key = jax.random.PRNGKey(0)
    N, max_disp, H, W = 2, 8, 16, 16
    # Probability-like volume (softmax over the disparity dim), as the module expects.
    logits = jax.random.normal(key, (N, max_disp, H, W), dtype=jnp.float32)
    prob = jax.nn.softmax(logits, axis=1)

    out = disparity_regression(prob)
    out = jax.block_until_ready(out)

    ref = disparity_regression_ref(prob)
    assert out.shape == (N, H, W)
    assert jnp.allclose(out, ref, atol=1e-5, rtol=1e-5)
    print("KERNEL_OK")
</pallas_src>

<mosaic_0001>
module attributes {stable_mosaic.version = 11 : i64} {
  func.func @kernel(%arg0: i32, %arg1: i32, %arg2: memref<1x8x16x16xf32, #tpu.memory_space<vmem>>, %arg3: memref<1x16x16xf32, #tpu.memory_space<vmem>>) attributes {dimension_semantics = [#tpu.dimension_semantics<parallel>, #tpu.dimension_semantics<parallel>], iteration_bounds = array<i64: 2, 1>, scalar_prefetch = 0 : i64, scratch_operands = 0 : i64, tpu.core_type = #tpu.core_type<tc>, window_params = [{transform_indices = @transform_0, window_bounds = array<i64: 1, 8, 16, 16>}, {transform_indices = @transform_1, window_bounds = array<i64: 1, 16, 16>}]} {
    %cst = arith.constant 0.000000e+00 : f32
    %0 = vector.broadcast %cst : f32 to vector<8x16xf32>
    %c0 = arith.constant 0 : index
    %c0_0 = arith.constant 0 : index
    %c0_1 = arith.constant 0 : index
    %c0_2 = arith.constant 0 : index
    %1 = vector.load %arg2[%c0, %c0_0, %c0_1, %c0_2] : memref<1x8x16x16xf32, #tpu.memory_space<vmem>>, vector<1x1x8x16xf32>
    %2 = vector.shape_cast %1 : vector<1x1x8x16xf32> to vector<8x16xf32>
    %cst_3 = arith.constant 0.000000e+00 : f32
    %cst_4 = arith.constant 0.000000e+00 : f32
    %3 = arith.addf %cst_3, %cst_4 : f32
    %4 = vector.broadcast %3 : f32 to vector<8x16xf32>
    %5 = arith.mulf %4, %2 : vector<8x16xf32>
    %6 = arith.addf %0, %5 : vector<8x16xf32>
    %c0_5 = arith.constant 0 : index
    %c1 = arith.constant 1 : index
    %c0_6 = arith.constant 0 : index
    %c0_7 = arith.constant 0 : index
    %7 = vector.load %arg2[%c0_5, %c1, %c0_6, %c0_7] : memref<1x8x16x16xf32, #tpu.memory_space<vmem>>, vector<1x1x8x16xf32>
    %8 = vector.shape_cast %7 : vector<1x1x8x16xf32> to vector<8x16xf32>
    %cst_8 = arith.constant 0.000000e+00 : f32
    %cst_9 = arith.constant 1.000000e+00 : f32
    %9 = arith.addf %cst_8, %cst_9 : f32
    %10 = vector.broadcast %9 : f32 to vector<8x16xf32>
    %11 = arith.mulf %10, %8 : vector<8x16xf32>
    %12 = arith.addf %6, %11 : vector<8x16xf32>
    %c0_10 = arith.constant 0 : index
    %c2 = arith.constant 2 : index
    %c0_11 = arith.constant 0 : index
    %c0_12 = arith.constant 0 : index
    %13 = vector.load %arg2[%c0_10, %c2, %c0_11, %c0_12] : memref<1x8x16x16xf32, #tpu.memory_space<vmem>>, vector<1x1x8x16xf32>
    %14 = vector.shape_cast %13 : vector<1x1x8x16xf32> to vector<8x16xf32>
    %cst_13 = arith.constant 0.000000e+00 : f32
    %cst_14 = arith.constant 2.000000e+00 : f32
    %15 = arith.addf %cst_13, %cst_14 : f32
    %16 = vector.broadcast %15 : f32 to vector<8x16xf32>
    %17 = arith.mulf %16, %14 : vector<8x16xf32>
    %18 = arith.addf %12, %17 : vector<8x16xf32>
    %c0_15 = arith.constant 0 : index
    %c3 = arith.constant 3 : index
    %c0_16 = arith.constant 0 : index
    %c0_17 = arith.constant 0 : index
    %19 = vector.load %arg2[%c0_15, %c3, %c0_16, %c0_17] : memref<1x8x16x16xf32, #tpu.memory_space<vmem>>, vector<1x1x8x16xf32>
    %20 = vector.shape_cast %19 : vector<1x1x8x16xf32> to vector<8x16xf32>
    %cst_18 = arith.constant 0.000000e+00 : f32
    %cst_19 = arith.constant 3.000000e+00 : f32
    %21 = arith.addf %cst_18, %cst_19 : f32
    %22 = vector.broadcast %21 : f32 to vector<8x16xf32>
    %23 = arith.mulf %22, %20 : vector<8x16xf32>
    %24 = arith.addf %18, %23 : vector<8x16xf32>
    %c0_20 = arith.constant 0 : index
    %c4 = arith.constant 4 : index
    %c0_21 = arith.constant 0 : index
    %c0_22 = arith.constant 0 : index
    %25 = vector.load %arg2[%c0_20, %c4, %c0_21, %c0_22] : memref<1x8x16x16xf32, #tpu.memory_space<vmem>>, vector<1x1x8x16xf32>
    %26 = vector.shape_cast %25 : vector<1x1x8x16xf32> to vector<8x16xf32>
    %cst_23 = arith.constant 0.000000e+00 : f32
    %cst_24 = arith.constant 4.000000e+00 : f32
    %27 = arith.addf %cst_23, %cst_24 : f32
    %28 = vector.broadcast %27 : f32 to vector<8x16xf32>
    %29 = arith.mulf %28, %26 : vector<8x16xf32>
    %30 = arith.addf %24, %29 : vector<8x16xf32>
    %c0_25 = arith.constant 0 : index
    %c5 = arith.constant 5 : index
    %c0_26 = arith.constant 0 : index
    %c0_27 = arith.constant 0 : index
    %31 = vector.load %arg2[%c0_25, %c5, %c0_26, %c0_27] : memref<1x8x16x16xf32, #tpu.memory_space<vmem>>, vector<1x1x8x16xf32>
    %32 = vector.shape_cast %31 : vector<1x1x8x16xf32> to vector<8x16xf32>
    %cst_28 = arith.constant 0.000000e+00 : f32
    %cst_29 = arith.constant 5.000000e+00 : f32
    %33 = arith.addf %cst_28, %cst_29 : f32
    %34 = vector.broadcast %33 : f32 to vector<8x16xf32>
    %35 = arith.mulf %34, %32 : vector<8x16xf32>
    %36 = arith.addf %30, %35 : vector<8x16xf32>
    %c0_30 = arith.constant 0 : index
    %c6 = arith.constant 6 : index
    %c0_31 = arith.constant 0 : index
    %c0_32 = arith.constant 0 : index
    %37 = vector.load %arg2[%c0_30, %c6, %c0_31, %c0_32] : memref<1x8x16x16xf32, #tpu.memory_space<vmem>>, vector<1x1x8x16xf32>
    %38 = vector.shape_cast %37 : vector<1x1x8x16xf32> to vector<8x16xf32>
    %cst_33 = arith.constant 0.000000e+00 : f32
    %cst_34 = arith.constant 6.000000e+00 : f32
    %39 = arith.addf %cst_33, %cst_34 : f32
    %40 = vector.broadcast %39 : f32 to vector<8x16xf32>
    %41 = arith.mulf %40, %38 : vector<8x16xf32>
    %42 = arith.addf %36, %41 : vector<8x16xf32>
    %c0_35 = arith.constant 0 : index
    %c7 = arith.constant 7 : index
    %c0_36 = arith.constant 0 : index
    %c0_37 = arith.constant 0 : index
    %43 = vector.load %arg2[%c0_35, %c7, %c0_36, %c0_37] : memref<1x8x16x16xf32, #tpu.memory_space<vmem>>, vector<1x1x8x16xf32>
    %44 = vector.shape_cast %43 : vector<1x1x8x16xf32> to vector<8x16xf32>
    %cst_38 = arith.constant 0.000000e+00 : f32
    %cst_39 = arith.constant 7.000000e+00 : f32
    %45 = arith.addf %cst_38, %cst_39 : f32
    %46 = vector.broadcast %45 : f32 to vector<8x16xf32>
    %47 = arith.mulf %46, %44 : vector<8x16xf32>
    %48 = arith.addf %42, %47 : vector<8x16xf32>
    %c0_40 = arith.constant 0 : index
    %c0_41 = arith.constant 0 : index
    %c0_42 = arith.constant 0 : index
    %49 = vector.load %arg3[%c0_40, %c0_41, %c0_42] : memref<1x16x16xf32, #tpu.memory_space<vmem>>, vector<1x8x16xf32>
    %50 = vector.shape_cast %49 : vector<1x8x16xf32> to vector<8x16xf32>
    %51 = vector.shape_cast %48 : vector<8x16xf32> to vector<1x8x16xf32>
    tpu.vector_store %arg3[%c0_40, %c0_41, %c0_42], %51 {strides = array<i32>} : memref<1x16x16xf32, #tpu.memory_space<vmem>>, vector<1x8x16xf32>,
    %cst_43 = arith.constant 0.000000e+00 : f32
    %52 = vector.broadcast %cst_43 : f32 to vector<8x16xf32>
    %c0_44 = arith.constant 0 : index
    %c0_45 = arith.constant 0 : index
    %c8 = arith.constant 8 : index
    %c0_46 = arith.constant 0 : index
    %53 = vector.load %arg2[%c0_44, %c0_45, %c8, %c0_46] : memref<1x8x16x16xf32, #tpu.memory_space<vmem>>, vector<1x1x8x16xf32>
    %54 = vector.shape_cast %53 : vector<1x1x8x16xf32> to vector<8x16xf32>
    %cst_47 = arith.constant 0.000000e+00 : f32
    %cst_48 = arith.constant 0.000000e+00 : f32
    %55 = arith.addf %cst_47, %cst_48 : f32
    %56 = vector.broadcast %55 : f32 to vector<8x16xf32>
    %57 = arith.mulf %56, %54 : vector<8x16xf32>
    %58 = arith.addf %52, %57 : vector<8x16xf32>
    %c0_49 = arith.constant 0 : index
    %c1_50 = arith.constant 1 : index
    %c8_51 = arith.constant 8 : index
    %c0_52 = arith.constant 0 : index
    %59 = vector.load %arg2[%c0_49, %c1_50, %c8_51, %c0_52] : memref<1x8x16x16xf32, #tpu.memory_space<vmem>>, vector<1x1x8x16xf32>
    %60 = vector.shape_cast %59 : vector<1x1x8x16xf32> to vector<8x16xf32>
    %cst_53 = arith.constant 0.000000e+00 : f32
    %cst_54 = arith.constant 1.000000e+00 : f32
    %61 = arith.addf %cst_53, %cst_54 : f32
    %62 = vector.broadcast %61 : f32 to vector<8x16xf32>
    %63 = arith.mulf %62, %60 : vector<8x16xf32>
    %64 = arith.addf %58, %63 : vector<8x16xf32>
    %c0_55 = arith.constant 0 : index
    %c2_56 = arith.constant 2 : index
    %c8_57 = arith.constant 8 : index
    %c0_58 = arith.constant 0 : index
    %65 = vector.load %arg2[%c0_55, %c2_56, %c8_57, %c0_58] : memref<1x8x16x16xf32, #tpu.memory_space<vmem>>, vector<1x1x8x16xf32>
    %66 = vector.shape_cast %65 : vector<1x1x8x16xf32> to vector<8x16xf32>
    %cst_59 = arith.constant 0.000000e+00 : f32
    %cst_60 = arith.constant 2.000000e+00 : f32
    %67 = arith.addf %cst_59, %cst_60 : f32
    %68 = vector.broadcast %67 : f32 to vector<8x16xf32>
    %69 = arith.mulf %68, %66 : vector<8x16xf32>
    %70 = arith.addf %64, %69 : vector<8x16xf32>
    %c0_61 = arith.constant 0 : index
    %c3_62 = arith.constant 3 : index
    %c8_63 = arith.constant 8 : index
    %c0_64 = arith.constant 0 : index
    %71 = vector.load %arg2[%c0_61, %c3_62, %c8_63, %c0_64] : memref<1x8x16x16xf32, #tpu.memory_space<vmem>>, vector<1x1x8x16xf32>
    %72 = vector.shape_cast %71 : vector<1x1x8x16xf32> to vector<8x16xf32>
    %cst_65 = arith.constant 0.000000e+00 : f32
    %cst_66 = arith.constant 3.000000e+00 : f32
    %73 = arith.addf %cst_65, %cst_66 : f32
    %74 = vector.broadcast %73 : f32 to vector<8x16xf32>
    %75 = arith.mulf %74, %72 : vector<8x16xf32>
    %76 = arith.addf %70, %75 : vector<8x16xf32>
    %c0_67 = arith.constant 0 : index
    %c4_68 = arith.constant 4 : index
    %c8_69 = arith.constant 8 : index
    %c0_70 = arith.constant 0 : index
    %77 = vector.load %arg2[%c0_67, %c4_68, %c8_69, %c0_70] : memref<1x8x16x16xf32, #tpu.memory_space<vmem>>, vector<1x1x8x16xf32>
    %78 = vector.shape_cast %77 : vector<1x1x8x16xf32> to vector<8x16xf32>
    %cst_71 = arith.constant 0.000000e+00 : f32
    %cst_72 = arith.constant 4.000000e+00 : f32
    %79 = arith.addf %cst_71, %cst_72 : f32
    %80 = vector.broadcast %79 : f32 to vector<8x16xf32>
    %81 = arith.mulf %80, %78 : vector<8x16xf32>
    %82 = arith.addf %76, %81 : vector<8x16xf32>
    %c0_73 = arith.constant 0 : index
    %c5_74 = arith.constant 5 : index
    %c8_75 = arith.constant 8 : index
    %c0_76 = arith.constant 0 : index
    %83 = vector.load %arg2[%c0_73, %c5_74, %c8_75, %c0_76] : memref<1x8x16x16xf32, #tpu.memory_space<vmem>>, vector<1x1x8x16xf32>
    %84 = vector.shape_cast %83 : vector<1x1x8x16xf32> to vector<8x16xf32>
    %cst_77 = arith.constant 0.000000e+00 : f32
    %cst_78 = arith.constant 5.000000e+00 : f32
    %85 = arith.addf %cst_77, %cst_78 : f32
    %86 = vector.broadcast %85 : f32 to vector<8x16xf32>
    %87 = arith.mulf %86, %84 : vector<8x16xf32>
    %88 = arith.addf %82, %87 : vector<8x16xf32>
    %c0_79 = arith.constant 0 : index
    %c6_80 = arith.constant 6 : index
    %c8_81 = arith.constant 8 : index
    %c0_82 = arith.constant 0 : index
    %89 = vector.load %arg2[%c0_79, %c6_80, %c8_81, %c0_82] : memref<1x8x16x16xf32, #tpu.memory_space<vmem>>, vector<1x1x8x16xf32>
    %90 = vector.shape_cast %89 : vector<1x1x8x16xf32> to vector<8x16xf32>
    %cst_83 = arith.constant 0.000000e+00 : f32
    %cst_84 = arith.constant 6.000000e+00 : f32
    %91 = arith.addf %cst_83, %cst_84 : f32
    %92 = vector.broadcast %91 : f32 to vector<8x16xf32>
    %93 = arith.mulf %92, %90 : vector<8x16xf32>
    %94 = arith.addf %88, %93 : vector<8x16xf32>
    %c0_85 = arith.constant 0 : index
    %c7_86 = arith.constant 7 : index
    %c8_87 = arith.constant 8 : index
    %c0_88 = arith.constant 0 : index
    %95 = vector.load %arg2[%c0_85, %c7_86, %c8_87, %c0_88] : memref<1x8x16x16xf32, #tpu.memory_space<vmem>>, vector<1x1x8x16xf32>
    %96 = vector.shape_cast %95 : vector<1x1x8x16xf32> to vector<8x16xf32>
    %cst_89 = arith.constant 0.000000e+00 : f32
    %cst_90 = arith.constant 7.000000e+00 : f32
    %97 = arith.addf %cst_89, %cst_90 : f32
    %98 = vector.broadcast %97 : f32 to vector<8x16xf32>
    %99 = arith.mulf %98, %96 : vector<8x16xf32>
    %100 = arith.addf %94, %99 : vector<8x16xf32>
    %c0_91 = arith.constant 0 : index
    %c8_92 = arith.constant 8 : index
    %c0_93 = arith.constant 0 : index
    %101 = vector.load %arg3[%c0_91, %c8_92, %c0_93] : memref<1x16x16xf32, #tpu.memory_space<vmem>>, vector<1x8x16xf32>
    %102 = vector.shape_cast %101 : vector<1x8x16xf32> to vector<8x16xf32>
    %103 = vector.shape_cast %100 : vector<8x16xf32> to vector<1x8x16xf32>
    tpu.vector_store %arg3[%c0_91, %c8_92, %c0_93], %103 {strides = array<i32>} : memref<1x16x16xf32, #tpu.memory_space<vmem>>, vector<1x8x16xf32>,
    return
  }
  func.func @transform_0(%arg0: i32, %arg1: i32) -> (i32, i32, i32, i32) {
    %c0_i32 = arith.constant 0 : i32
    %c0_i32_0 = arith.constant 0 : i32
    %c0_i32_1 = arith.constant 0 : i32
    return %arg0, %c0_i32, %arg1, %c0_i32_0 : i32, i32, i32, i32
  }
  func.func @transform_1(%arg0: i32, %arg1: i32) -> (i32, i32, i32) {
    %c0_i32 = arith.constant 0 : i32
    %c0_i32_0 = arith.constant 0 : i32
    return %arg0, %arg1, %c0_i32 : i32, i32, i32
  }
}

</mosaic_0001>

<bundles_post_ra>
// kernel: tpu_custom_call.1
= control target key start
LH: loop header
LB: loop body
LE: loop exit
PB: predicated region body
PF: predicated region fallthrough
CT: control target
= control target key end

     0   :  { %6 = vsyncpa [#allocation3], 0  ;;  %s682_s0 = inlined_call_operand.hbm [shape: f32[2,8,16,16], index: 0, kind: input, shape index: {}]   ;;  %s683_s1 = inlined_call_operand.hbm [shape: f32[2,16,16], index: 1, kind: output, shape index: {}]  }
   0x1   :  { %8 = vsyncpa [#allocation3 + $0x1], 0 }
   0x2   :  { %9 = vsyncpa [#allocation4], 0 }
   0x3   :  { %11 = vsyncpa [#allocation4 + $0x1], 0  ;;  %s543_s6 = smov 0   ;;  %s545_s7 = smov 0  }
   0x4   :  { %s547_s8 = smov 0   ;;  %s549_s9 = smov 0  }
   0x5   :  { %s551_s10 = smov 0   ;;  %s553_s11 = smov 0  }
   0x6 LB: > { %s318_s12 = sadd.s32 4294967295, %s527_s11   ;;  %s319_s13 = sadd.s32 4294967294, %s527_s11   ;;  %s527_s11 = sphi %s553_s11, %s17_s11   ;;  %s523_s10 = sphi %s551_s10, %s692_s10   ;;  %s519_s9 = sphi %s549_s9, %s691_s9   ;;  %s515_s8 = sphi %s547_s8, %s690_s8   ;;  %s511_s7 = sphi %s545_s7, %s689_s7   ;;  %s507_s6 = sphi %s543_s6, %s688_s6  }
   0x7   : > { %s29_s14 = sadd.s32 1, %s523_s10  ;;  %s38_s15 = sadd.s32 1, %s515_s8 }
   0x8   : > { %p31_p0 = scmp.ge.s32.totalorder %s29_s14, 2  ;;  %p45_p1 = scmp.ne.s32.totalorder %s515_s8, %s511_s7 }
   0x9   : > { %p46_p2 = scmp.eq.s32.totalorder %s527_s11, 0  ;;  %p51_p3 = scmp.ne.s32.totalorder %s511_s7, %s507_s6 }
   0xa   : > { %s694_s14 = smov (%p31_p0, %s29_s14), 0  ;;  %p52_p5 = scmp.eq.s32.totalorder %s318_s12, 0 }
   0xb   : > { %p584_p4 = por %p46_p2, %p45_p1  ;;  %s33_s17 = ssub.s32 %s523_s10, %s694_s14 }
   0xc   : > { %p77_p6 = scmp.eq.s32.totalorder %s318_s12, 1  ;;  %p36_p7 = scmp.eq.s32.totalorder %s33_s17, 0 }
   0xd   : > { %p590_p8 = por %p52_p5, %p51_p3  ;;  %p83_p10 = scmp.eq.s32.totalorder %s319_s13, 1 }
   0xe   : > { %p594_p9 = por %p77_p6, %p45_p1  ;;  %p321_p12 = scmp.ge.s32.totalorder %s527_s11, 2 }
   0xf   : > { %s599_s20 = scalar_select %p36_p7, %s515_s8, %s38_s15  }
  0x10   : > { %p601_p11 = por %p83_p10, %p51_p3  ;;  %p361_p13 = scmp.lt.s32.totalorder %s527_s11, 2 }
  0x11   : > { %s103_s22 = sand.u32 1, %s515_s8   ;;  %s347_s24 = sshll.u32 %s523_s10, 7 }
  0x12   : > { %s322_s23 = sshll.u32 %s103_s22, 7  ;;  %s114_s27 = scalar_lea.hbm %s682_s0, %s347_s24 }
  0x13   : > { %s107_s28 = scalar_lea.vmem [#allocation2], %s322_s23  ;;  %s115_s30 = sshll.u32 %s114_s27, 4  ;;  %s116_s30 = int_to_ptr.hbm [resolvable:$true] %s115_s30 }
  0x14   : > { %s117_s29 = sshll.u32 %s107_s28, 4  ;;  %p354_p0 = pnand %p361_p13, %p584_p4  ;;  %s118_s29 = int_to_ptr.vmem [resolvable:$true] %s117_s29 }
  0x15   : > { %p325_p1 = scmp.ge.s32.totalorder %s527_s11, 1  ;;  %s104_s2 = scalar_lea.sflag [#allocation3], %s103_s22 }
  0x16   : > { %s529_s3 = smov 128   ;;  %s530_s4 = smov 8  }
  0x17   : > { %356 = dma.hbm_to_vmem [thread:$0]  (!%p354_p0), %s116_s30, 2048, %s118_s29, %s104_s2, %s529_s3, %s529_s3, %s530_s4  }
  0x18   : > { %p125_p2 = scmp.lt.s32.totalorder %s527_s11, 3 }
  0x1a   : > { %p126_p3 = pnand %p325_p1, %p125_p2 }
  0x1b   : > { %s617_s5 = sand.u32 (!%p126_p3), 1, %s511_s7  }
  0x1c   : > { %129 = sbr.rel (%p126_p3) target bundleno = 56 (0x38), region = 24  ;;  %s326_s12 = sshll.u32 (!%p126_p3), %s617_s5, 7 }
  0x1d   : > { %s132_s13 = scalar_lea.sflag (!%p126_p3), [#allocation3], %s617_s5  ;;  %s621_s15 = scalar_lea.vmem (!%p126_p3), [#allocation2], %s326_s12 }
  0x21   : > { %498 = dma.done.wait (%p590_p8), %s132_s13, 2048  }
  0x22   : > { %500 = vsyncadd (%p590_p8), %s132_s13, 4294965248  ;;  %v157_v0 = vld [vmem:[%s621_s15] sm:$0xff]  ;;  %v328_v1 = vld [vmem:[%s621_s15 + $0x10] sm:$0xff]  ;;  %s327_s16 = sshll.u32 %s617_s5, 4  ;;  %s348_s17 = sshll.u32 %s519_s9, 4  ;;  %vm187_vm0 = vcmask 130048  }
  0x23   : > { %v329_v2 = vld [vmem:[%s621_s15 + $0x20] sm:$0xff]  ;;  %v158_v3 = vmul.f32 0.0, %v157_v0  ;;  %v330_v5 = vld [vmem:[%s621_s15 + $0x30] sm:$0xff]  ;;  %v189_v7 = vld [vmem:[%s621_s15 + $0x8] sm:$0xff]  ;;  %s227_s23 = scalar_lea.hbm %s683_s1, %s348_s17  ;;  %s154_s24 = scalar_lea.vmem [#allocation5], %s327_s16 }
  0x24   : > { %v165_v4 = vmul.f32 2.0, %v329_v2  ;;  %v331_v6 = vld [vmem:[%s621_s15 + $0x40] sm:$0xff]  ;;  %v169_v9 = vmul.f32 3.0, %v330_v5  ;;  %v190_v10 = vmul.f32 0.0, %v189_v7  ;;  %v335_v11 = vld [vmem:[%s621_s15 + $0x18] sm:$0xff]  ;;  %v336_v12 = vld [vmem:[%s621_s15 + $0x28] sm:$0xff] }
  0x25   : > { %v162_v8 = vadd.f32 %v328_v1, %v158_v3  ;;  %v337_v13 = vld [vmem:[%s621_s15 + $0x38] sm:$0xff]  ;;  %v332_v14 = vld [vmem:[%s621_s15 + $0x50] sm:$0xff]  ;;  %v195_v15 = vmul.f32 2.0, %v336_v12  ;;  %v338_v16 = vld [vmem:[%s621_s15 + $0x48] sm:$0xff]  ;;  %v173_v18 = vmul.f32 4.0, %v331_v6  ;;  %s228_s25 = sshll.u32 %s154_s24, 4  ;;  %s229_s25 = int_to_ptr.vmem [resolvable:$true] %s228_s25 }
  0x26   : > { %v193_v19 = vadd.f32 %v335_v11, %v190_v10  ;;  %v198_v20 = vmul.f32 3.0, %v337_v13  ;;  %v333_v21 = vld [vmem:[%s621_s15 + $0x60] sm:$0xff]  ;;  %v339_v22 = vld [vmem:[%s621_s15 + $0x58] sm:$0xff]  ;;  %v177_v24 = vmul.f32 5.0, %v332_v14  ;;  %v201_v26 = vmul.f32 4.0, %v338_v16  ;;  %v334_v27 = vld [vmem:[%s621_s15 + $0x70] sm:$0xff] }
  0x27   : > { %v166_v17 = vadd.f32 %v165_v4, %v162_v8  ;;  %v340_v28 = vld [vmem:[%s621_s15 + $0x68] sm:$0xff]  ;;  %v181_v30 = vmul.f32 6.0, %v333_v21  ;;  %v204_v32 = vmul.f32 5.0, %v339_v22  ;;  %v341_v33 = vld [vmem:[%s621_s15 + $0x78] sm:$0xff]  ;;  %v185_v35 = vmul.f32 7.0, %v334_v27  ;;  %s230_s9 = sshll.u32 %s227_s23, 4  ;;  %s231_s9 = int_to_ptr.hbm [resolvable:$true] %s230_s9 }
  0x28   : > { %v196_v25 = vadd.f32 %v195_v15, %v193_v19  ;;  %v207_v37 = vmul.f32 6.0, %v340_v28  ;;  %v210_v40 = vmul.f32 7.0, %v341_v33  ;;  %s214_s26 = scalar_lea.sflag [#allocation4], %s617_s5  ;;  %s459_s27 = sshra.s32 %s231_s9, 4  ;;  %s460_s27 = int_to_ptr.hbm [resolvable:$true] %s459_s27 }
  0x29   : > { %v170_v23 = vadd.f32 %v169_v9, %v166_v17  ;;  %s461_s28 = scalar_lea.hbm %s460_s27, 16  ;;  %s465_s2 = scalar_lea.hbm %s683_s1, 32 }
  0x2a   : > { %v199_v31 = vadd.f32 %v198_v20, %v196_v25  ;;  %p462_p4 = scmp.ne.s32.totalorder %s460_s27, %s461_s28  ;;  %p466_p7 = scmp.lt.s32.totalorder %s460_s27, %s683_s1 }
  0x2b   : > { %v174_v29 = vadd.f32 %v173_v18, %v170_v23  ;;  %p467_p8 = scmp.lt.s32.totalorder %s465_s2, %s461_s28 }
  0x2c   : > { %v202_v36 = vadd.f32 %v201_v26, %v199_v31  ;;  %p463_p5 = pnand %p462_p4, %p594_p9 }
  0x2d   : > { %v178_v34 = vadd.f32 %v177_v24, %v174_v29  ;;  %p468_p10 = por %p467_p8, %p466_p7 }
  0x2e   : > { %v205_v39 = vadd.f32 %v204_v32, %v202_v36  ;;  %p464_p6 = pneg %p463_p5 }
  0x2f   : > { %v182_v38 = vadd.f32 %v181_v30, %v178_v34 }
  0x30   : > { %v208_v42 = vadd.f32 %v207_v37, %v205_v39  ;;  %p469_p13 = pnand %p468_p10, %p464_p6 }
  0x31   : > { %v186_v41 = vadd.f32 %v185_v35, %v182_v38 }
  0x32   : > { %v211_v43 = vadd.f32 %v210_v40, %v208_v42 }
  0x33   : > { %188 = vst.msk [vmem:[%s154_s24] sm:$0xff] %vm187_vm0, %v186_v41 }
  0x34   : > { %212 = vst.msk [vmem:[%s154_s24 + $0x8] sm:$0xff] %vm187_vm0, %v211_v43 }
  0x35   : > { %472 = shalt.err (!%p469_p13)
}
  0x36   : > { %s531_s5 = smov 128   ;;  %s532_s12 = smov 8  }
  0x37   : > { %351 = dma.vmem_to_hbm [thread:$0]  (%p594_p9), %s229_s25, 256, %s231_s9, %s214_s26, %s531_s5, %s531_s5, %s532_s12  }
  0x38 PF: > { %s245_s13 = sand.u32 1, %s507_s6   ;;  %p358_p0 = pnand %p321_p12, %p601_p11 }
  0x39   : > { %s246_s15 = scalar_lea.sflag [#allocation4], %s245_s13 }
  0x3a   : > { %p359_p1 = pneg %p358_p0 }
  0x3c   : > { %502 = dma.done.wait (%p359_p1), %s246_s15, 256  }
  0x3d   : > { %504 = vsyncadd (%p359_p1), %s246_s15, 4294967040  ;;  %s17_s11 = sadd.s32 1, %s527_s11   ;;  %s688_s6 = smov %s511_s7 }
  0x3e   : > { %p14_p2 = scmp.ge.s32.totalorder %s17_s11, 4   ;;  %s689_s7 = smov %s515_s8 }
  0x3f   : > { %s690_s8 = smov %s599_s20  ;;  %s691_s9 = smov %s523_s10 }
  0x40   : > { %s692_s10 = smov %s694_s14  ;;  %16 = sbr.rel (!%p14_p2) target bundleno = 6 (0x6), region = 76 }
  0x45   :  { %252 = vsyncpa [#allocation3], 1 }
  0x46   :  { %254 = vsyncpa [#allocation3 + $0x1], 1 }
  0x47   :  { %255 = vsyncpa [#allocation4], 1 }
  0x48   :  { %257 = vsyncpa [#allocation4 + $0x1], 1 }

</bundles_post_ra>
